<compile_context>
chip_gen: v7x
topology: tpu7x:2x2x1
jax: 0.10.0
libtpu: 0.0.40
codegen_flags: <defaults>
</compile_context>

<pallas_src>
import jax
import jax.numpy as jnp
from jax.experimental import pallas as pl
from jax.experimental.pallas import tpu as pltpu


def _round_up(x: int, m: int) -> int:
    return ((x + m - 1) // m) * m


def _lm_head_kernel_f32out(x_ref, wt_ref, b_ref, o_ref):
    """f32 output: accumulate directly into the (resident) output block."""
    # x_ref: (tm, tk) bf16, wt_ref: (tk, tn) bf16, b_ref: (1, tn) f32, o_ref: (tm, tn) f32
    k = pl.program_id(2)

    @pl.when(k == 0)
    def _():
        o_ref[...] = jnp.broadcast_to(b_ref[...], o_ref.shape)

    o_ref[...] += jnp.dot(x_ref[...], wt_ref[...],
                          preferred_element_type=jnp.float32)


def _lm_head_kernel_acc(x_ref, wt_ref, b_ref, o_ref, acc_ref):
    """Generic output dtype: f32 VMEM scratch accumulator, cast at k==last."""
    k = pl.program_id(2)

    @pl.when(k == 0)
    def _():
        acc_ref[...] = jnp.zeros_like(acc_ref)

    acc_ref[...] += jnp.dot(x_ref[...], wt_ref[...],
                            preferred_element_type=jnp.float32)

    @pl.when(k == pl.num_programs(2) - 1)
    def _():
        o_ref[...] = (acc_ref[...] + b_ref[...]).astype(o_ref.dtype)


def ent_linear_lm_head(features, weight, bias, *,
                       tm=512, tn=1024, tk=512,
                       compute_dtype=jnp.bfloat16):
    """features: (batch, seq, hidden); weight: (num_ent, hidden); bias: (num_ent,)."""
    batch, seq, hidden = features.shape
    num_ent, h2 = weight.shape
    assert h2 == hidden
    M = batch * seq
    out_dtype = features.dtype

    # Shrink tiles for small problems (keep (8, 128) alignment).
    tm = min(tm, _round_up(M, 8))
    tn = min(tn, _round_up(num_ent, 128))
    tk = min(tk, _round_up(hidden, 128))

    # Megacore (v7x) guard: keep at least 2 tiles on a "parallel" axis when the
    # problem is big enough to split, so a (1, 1, K) grid doesn't idle a core.
    def _n_tiles(dim, t):
        return _round_up(dim, t) // t

    if _n_tiles(M, tm) * _n_tiles(num_ent, tn) == 1:
        if _round_up(num_ent, 128) >= 2 * 128:
            tn = _round_up(max(128, _round_up(num_ent, 128) // 2), 128)
        elif _round_up(M, 8) >= 2 * 8:
            tm = _round_up(max(8, _round_up(M, 8) // 2), 8)

    M_p = _round_up(M, tm)
    E_p = _round_up(num_ent, tn)
    H_p = _round_up(hidden, tk)

    # Activations: flatten, cast to bf16, pad to tile grid.
    x2d = features.reshape(M, hidden).astype(compute_dtype)
    if (M_p, H_p) != (M, hidden):
        x2d = jnp.pad(x2d, ((0, M_p - M), (0, H_p - hidden)))

    # Weight: cast + present as (hidden, num_ent) so the kernel does plain x @ wT.
    w_t = weight.T.astype(compute_dtype)
    if (H_p, E_p) != (hidden, num_ent):
        w_t = jnp.pad(w_t, ((0, H_p - hidden), (0, E_p - num_ent)))

    # Bias kept in f32 for the f32 accumulation.
    b_p = bias.astype(jnp.float32)
    if E_p != num_ent:
        b_p = jnp.pad(b_p, (0, E_p - num_ent))
    b2d = b_p.reshape(1, E_p)

    grid = (M_p // tm, E_p // tn, H_p // tk)

    cost = pl.CostEstimate(
        flops=2 * M_p * E_p * H_p,
        transcendentals=0,
        bytes_accessed=(M_p * H_p * x2d.dtype.itemsize
                        + H_p * E_p * w_t.dtype.itemsize
                        + M_p * E_p * out_dtype.itemsize),
    )

    if out_dtype == jnp.float32:
        kernel = _lm_head_kernel_f32out
        scratch_shapes = []
    else:
        kernel = _lm_head_kernel_acc
        scratch_shapes = [pltpu.VMEM((tm, tn), jnp.float32)]

    out2d = pl.pallas_call(
        kernel,
        out_shape=jax.ShapeDtypeStruct((M_p, E_p), out_dtype),
        grid_spec=pltpu.PrefetchScalarGridSpec(
            num_scalar_prefetch=0,
            grid=grid,
            in_specs=[
                pl.BlockSpec((tm, tk), lambda i, j, k: (i, k)),   # activations
                pl.BlockSpec((tk, tn), lambda i, j, k: (k, j)),   # weight (H, E) tile
                pl.BlockSpec((1, tn), lambda i, j, k: (0, j)),    # bias tile
            ],
            out_specs=pl.BlockSpec((tm, tn), lambda i, j, k: (i, j)),
            scratch_shapes=scratch_shapes,
        ),
        compiler_params=pltpu.CompilerParams(
            dimension_semantics=("parallel", "parallel", "arbitrary"),
            vmem_limit_bytes=48 * 1024 * 1024,
        ),
        cost_estimate=cost,
    )(x2d, w_t, b2d)

    out2d = out2d[:M, :num_ent]
    return out2d.reshape(batch, seq, num_ent)


if __name__ == "__main__":
    # Small synthetic config: hidden_size=32, num_ent=64, batch=2, seq=8.
    batch, seq, hidden, num_ent = 2, 8, 32, 64

    key = jax.random.PRNGKey(0)
    k_x, k_w, k_b = jax.random.split(key, 3)

    features = jax.random.normal(k_x, (batch, seq, hidden), dtype=jnp.float32)

    # Deterministic init mimicking nn.Linear's uniform(-1/sqrt(fan_in), 1/sqrt(fan_in)).
    bound = 1.0 / (hidden ** 0.5)
    weight = jax.random.uniform(k_w, (num_ent, hidden), dtype=jnp.float32,
                                minval=-bound, maxval=bound)
    bias = jax.random.uniform(k_b, (num_ent,), dtype=jnp.float32,
                              minval=-bound, maxval=bound)

    out = jax.block_until_ready(ent_linear_lm_head(features, weight, bias))
    assert out.shape == (batch, seq, num_ent)

    # Tight check against a reference that mirrors the kernel numerics
    # (bf16 operands, f32 accumulation).
    ref_bf16 = (jnp.dot(features.reshape(-1, hidden).astype(jnp.bfloat16),
                        weight.T.astype(jnp.bfloat16),
                        preferred_element_type=jnp.float32)
                + bias).reshape(batch, seq, num_ent)
    assert jnp.allclose(out, ref_bf16, atol=1e-3, rtol=1e-3)

    # Loose sanity check against the module's full-f32 math (bf16 input rounding).
    ref_f32 = features @ weight.T + bias
    assert jnp.allclose(out, ref_f32, atol=5e-2, rtol=5e-2)

    # Also exercise a non-tile-aligned "decode-like" shape to verify padding path
    # and the megacore grid guard.
    b2, s2, h2, e2 = 3, 5, 48, 200
    f2 = jax.random.normal(k_x, (b2, s2, h2), dtype=jnp.float32)
    w2 = jax.random.uniform(k_w, (e2, h2), dtype=jnp.float32, minval=-0.1, maxval=0.1)
    bb2 = jax.random.uniform(k_b, (e2,), dtype=jnp.float32, minval=-0.1, maxval=0.1)
    out2 = jax.block_until_ready(ent_linear_lm_head(f2, w2, bb2))
    ref2_bf16 = (jnp.dot(f2.reshape(-1, h2).astype(jnp.bfloat16),
                         w2.T.astype(jnp.bfloat16),
                         preferred_element_type=jnp.float32)
                 + bb2).reshape(b2, s2, e2)
    assert jnp.allclose(out2, ref2_bf16, atol=1e-3, rtol=1e-3)
    ref2_f32 = f2 @ w2.T + bb2
    assert jnp.allclose(out2, ref2_f32, atol=5e-2, rtol=5e-2)

    print("KERNEL_OK")
</pallas_src>

<mosaic_0001>
module attributes {stable_mosaic.version = 11 : i64} {
  func.func @_lm_head_kernel_f32out(%arg0: i32, %arg1: i32, %arg2: i32, %arg3: memref<8x128xbf16, #tpu.memory_space<vmem>>, %arg4: memref<128x128xbf16, #tpu.memory_space<vmem>>, %arg5: memref<1x128xf32, #tpu.memory_space<vmem>>, %arg6: memref<8x128xf32, #tpu.memory_space<vmem>>) attributes {dimension_semantics = [#tpu.dimension_semantics<parallel>, #tpu.dimension_semantics<parallel>, #tpu.dimension_semantics<arbitrary>], iteration_bounds = array<i64: 2, 1, 1>, scalar_prefetch = 0 : i64, scratch_operands = 0 : i64, tpu.core_type = #tpu.core_type<tc>, window_params = [{transform_indices = @transform_0, window_bounds = array<i64: 8, 128>}, {transform_indices = @transform_1, window_bounds = array<i64: 128, 128>}, {transform_indices = @transform_2, window_bounds = array<i64: 1, 128>}, {transform_indices = @transform_3, window_bounds = array<i64: 8, 128>}]} {
    %c0_i32 = arith.constant 0 : i32
    %0 = arith.cmpi eq, %arg2, %c0_i32 : i32
    %1 = arith.extui %0 : i1 to i32
    %c0_i32_0 = arith.constant 0 : i32
    %2 = arith.cmpi ne, %1, %c0_i32_0 : i32
    scf.if %2 {
      %c0_8 = arith.constant 0 : index
      %c0_9 = arith.constant 0 : index
      %9 = vector.load %arg5[%c0_8, %c0_9] : memref<1x128xf32, #tpu.memory_space<vmem>>, vector<1x128xf32>
      %10 = vector.shape_cast %9 : vector<1x128xf32> to vector<1x128xf32>
      %11 = vector.broadcast %10 : vector<1x128xf32> to vector<8x128xf32>
      %c0_10 = arith.constant 0 : index
      %c0_11 = arith.constant 0 : index
      %12 = vector.load %arg6[%c0_10, %c0_11] : memref<8x128xf32, #tpu.memory_space<vmem>>, vector<8x128xf32>
      tpu.vector_store %arg6[%c0_10, %c0_11], %11 {strides = array<i32>} : memref<8x128xf32, #tpu.memory_space<vmem>>, vector<8x128xf32>,
    } else {
    }
    %c0 = arith.constant 0 : index
    %c0_1 = arith.constant 0 : index
    %3 = vector.load %arg6[%c0, %c0_1] : memref<8x128xf32, #tpu.memory_space<vmem>>, vector<8x128xf32>
    %c0_2 = arith.constant 0 : index
    %c0_3 = arith.constant 0 : index
    %4 = vector.load %arg3[%c0_2, %c0_3] : memref<8x128xbf16, #tpu.memory_space<vmem>>, vector<8x128xbf16>
    %c0_4 = arith.constant 0 : index
    %c0_5 = arith.constant 0 : index
    %5 = vector.load %arg4[%c0_4, %c0_5] : memref<128x128xbf16, #tpu.memory_space<vmem>>, vector<128x128xbf16>
    %cst = arith.constant dense<0.000000e+00> : vector<8x128xf32>
    %6 = tpu.matmul %4, %5, %cst {dimension_numbers = #tpu.dot_dimension_numbers<[1], [0], [0], [1], [0, 0, 1, 1], [], []>} : vector<8x128xbf16>, vector<128x128xbf16>, vector<8x128xf32> -> vector<8x128xf32>
    %7 = arith.addf %3, %6 : vector<8x128xf32>
    %c0_6 = arith.constant 0 : index
    %c0_7 = arith.constant 0 : index
    %8 = vector.load %arg6[%c0_6, %c0_7] : memref<8x128xf32, #tpu.memory_space<vmem>>, vector<8x128xf32>
    tpu.vector_store %arg6[%c0_6, %c0_7], %7 {strides = array<i32>} : memref<8x128xf32, #tpu.memory_space<vmem>>, vector<8x128xf32>,
    return
  }
  func.func @transform_0(%arg0: i32, %arg1: i32, %arg2: i32) -> (i32, i32) {
    %c0_i32 = arith.constant 0 : i32
    return %arg0, %arg2 : i32, i32
  }
  func.func @transform_1(%arg0: i32, %arg1: i32, %arg2: i32) -> (i32, i32) {
    %c0_i32 = arith.constant 0 : i32
    return %arg2, %arg1 : i32, i32
  }
  func.func @transform_2(%arg0: i32, %arg1: i32, %arg2: i32) -> (i32, i32) {
    %c0_i32 = arith.constant 0 : i32
    %c0_i32_0 = arith.constant 0 : i32
    return %c0_i32, %arg1 : i32, i32
  }
  func.func @transform_3(%arg0: i32, %arg1: i32, %arg2: i32) -> (i32, i32) {
    %c0_i32 = arith.constant 0 : i32
    return %arg0, %arg1 : i32, i32
  }
}

</mosaic_0001>

<bundles_post_ra>
// kernel: tpu_custom_call.1
= control target key start
LH: loop header
LB: loop body
LE: loop exit
PB: predicated region body
PF: predicated region fallthrough
CT: control target
= control target key end

     0   :  { %8 = vsyncpa [#allocation3], 0  ;;  %s1029_s0 = inlined_call_operand.hbm [shape: bf16[16,128], index: 0, kind: input, shape index: {}]   ;;  %s1030_s1 = inlined_call_operand.hbm [shape: bf16[128,128], index: 1, kind: input, shape index: {}]   ;;  %s1031_s2 = inlined_call_operand.vmem [shape: f32[1,128], index: 2, kind: input, shape index: {}]   ;;  %s1032_s3 = inlined_call_operand.hbm [shape: f32[16,128], index: 3, kind: output, shape index: {}]  }
   0x1   :  { %10 = vsyncpa [#allocation3 + $0x1], 0 }
   0x2   :  { %11 = vsyncpa [#allocation6], 0 }
   0x3   :  { %12 = vsyncpa [#allocation4], 0 }
   0x4   :  { %14 = vsyncpa [#allocation4 + $0x1], 0  ;;  %s808_s12 = smov 0   ;;  %s810_s13 = smov 0  }
   0x5   :  { %s812_s14 = smov 0   ;;  %s814_s15 = smov 0  }
   0x6   :  { %s816_s16 = smov 0   ;;  %s818_s17 = smov 0  }
   0x7 LB: > { %s496_s18 = sadd.s32 4294967295, %s779_s17   ;;  %s497_s19 = sadd.s32 4294967294, %s779_s17   ;;  %s779_s17 = sphi %s818_s17, %s20_s17   ;;  %s775_s16 = sphi %s816_s16, %s1056_s16   ;;  %s771_s15 = sphi %s814_s15, %s1055_s15   ;;  %s767_s14 = sphi %s812_s14, %s1054_s14   ;;  %s763_s13 = sphi %s810_s13, %s1053_s13   ;;  %s759_s12 = sphi %s808_s12, %s1052_s12  }
   0x8   : > { %p61_p0 = scmp.ne.s32.totalorder %s763_s13, %s759_s12  ;;  %p842_p1 = scmp.eq.s32.totalorder %s496_s18, 0 }
   0x9   : > { %p846_p2 = scmp.eq.s32.totalorder %s496_s18, 1  ;;  %p147_p3 = scmp.eq.s32.totalorder %s497_s19, 1 }
   0xa   : > { %s1037_s20 = scalar_select %p842_p1, 1, 0 }
   0xb   : > { %s1038_s21 = scalar_select %p846_p2, 1, 0 }
   0xc   : > { %p852_p4 = por %p842_p1, %p61_p0  ;;  %p498_p5 = scmp.ge.s32.totalorder %s779_s17, 1 }
   0xd   : > { %p857_p6 = por %p147_p3, %p61_p0  ;;  %p154_p7 = scmp.lt.s32.totalorder %s779_s17, 3 }
   0xe   : > { %s1039_s22 = scalar_select %p852_p4, 1, 0 }
   0xf   : > { %s1040_s23 = scalar_select %p857_p6, 1, 0 }
  0x10   : > { %p862_p8 = pnand %p498_p5, %p154_p7  ;;  %s781_s25 = smov [#allocation5]  }
  0x11   : > { %s170_s26 = sshll.u32 %s781_s25, 4  ;;  %s39_s28 = sadd.s32 1, %s775_s16  ;;  %s171_s26 = int_to_ptr.vmem [resolvable:$true] %s170_s26 }
  0x12   : > { %s1041_s24 = scalar_select %p862_p8, 1, 0 }
  0x13   : > { %p558_p9 = pneg %p862_p8  ;;  %s635_s4 = scalar_lea.hbm %s1030_s1, 1024 }
  0x14   : > { %p636_p12 = scmp.ne.s32.totalorder %s1030_s1, %s635_s4  ;;  %p642_p5 = scmp.lt.u32.totalorder %s635_s4, %s1030_s1 }
  0x15   : > { %p871_p11 = pnand %p558_p9, %p842_p1 }
  0x17   : > { %p637_p13 = pneg %p871_p11 }
  0x19   : > { %p638_p0 = pnand %p637_p13, %p636_p12 }
  0x1b   : > { %p639_p3 = pneg %p638_p0 }
  0x1d   : > { %p644_p7 = pnand %p642_p5, %p639_p3 }
  0x1f   : > { %647 = shalt.err (!%p644_p7)
}
  0x20   : > { %s648_s9 = scalar_lea.vmem %s171_s26, 1024  ;;  %p656_p1 = scmp.lt.s32.totalorder %s171_s26, %s171_s26 }
  0x21   : > { %p649_p9 = scmp.ne.s32.totalorder %s171_s26, %s648_s9  ;;  %p657_p4 = scmp.lt.s32.totalorder %s648_s9, %s648_s9 }
  0x23   : > { %p651_p10 = pnand %p649_p9, %p637_p13  ;;  %p658_p8 = por %p657_p4, %p656_p1 }
  0x25   : > { %p652_p6 = pneg %p651_p10 }
  0x27   : > { %p659_p2 = pnand %p658_p8, %p652_p6 }
  0x29   : > { %662 = shalt.err (!%p659_p2)
}
  0x2a   : > { %s782_s10 = smov 64   ;;  %s783_s11 = smov 4  }
  0x2b   : > { %561 = dma.hbm_to_vmem [thread:$0]  (!%p871_p11), %s1030_s1, 1024, %s171_s26, [#allocation6], %s782_s10, %s782_s10, %s783_s11  }
  0x2c   : > { %p41_p1 = scmp.ge.s32.totalorder %s39_s28, 2  ;;  %s48_s25 = sadd.s32 1, %s767_s14 }
  0x2d   : > { %p55_p2 = scmp.ne.s32.totalorder %s767_s14, %s763_s13  ;;  %p56_p4 = scmp.eq.s32.totalorder %s779_s17, 0 }
  0x2e   : > { %s1058_s28 = smov (%p41_p1, %s39_s28), 0  ;;  %p1044_p8 = scmp.ne.s32.totalorder %s1038_s21, 0 }
  0x2f   : > { %p898_p6 = por %p56_p4, %p55_p2  ;;  %s43_s27 = ssub.s32 %s775_s16, %s1058_s28 }
  0x30   : > { %p904_p10 = por %p1044_p8, %p55_p2  ;;  %p571_p12 = scmp.lt.s32.totalorder %s779_s17, 2 }
  0x31   : > { %p46_p11 = scmp.eq.s32.totalorder %s43_s27, 0  ;;  %s190_s26 = sand.u32 1, %s767_s14  }
  0x32   : > { %s502_s4 = sshll.u32 %s190_s26, 2  ;;  %s503_s6 = sshll.u32 %s775_s16, 6 }
  0x33   : > { %s913_s5 = scalar_select %p46_p11, %s767_s14, %s48_s25  }
  0x34   : > { %s919_s9 = scalar_lea.hbm %s1029_s0, %s503_s6  ;;  %s194_s21 = scalar_lea.vmem [#allocation2], %s502_s4 }
  0x35   : > { %s202_s10 = sshll.u32 %s194_s21, 4  ;;  %p925_p13 = pnand %p571_p12, %p898_p6  ;;  %s921_s10 = int_to_ptr.vmem [resolvable:$true] %s202_s10 }
  0x36   : > { %s191_s18 = scalar_lea.sflag [#allocation3], %s190_s26  ;;  %s663_s19 = scalar_lea.hbm %s919_s9, 64 }
  0x37   : > { %p664_p0 = scmp.ne.s32.totalorder %s919_s9, %s663_s19  ;;  %p665_p3 = pneg %p925_p13 }
  0x38   : > { %s668_s4 = scalar_lea.hbm %s1029_s0, 128  ;;  %p669_p9 = scmp.lt.u32.totalorder %s919_s9, %s1029_s0 }
  0x39   : > { %p666_p5 = pnand %p665_p3, %p664_p0  ;;  %p670_p1 = scmp.lt.u32.totalorder %s668_s4, %s663_s19 }
  0x3a   : > { %p672_p4 = scmp.lt.u32.totalorder %s663_s19, %s919_s9 }
  0x3b   : > { %p667_p7 = pneg %p666_p5  ;;  %p671_p2 = por %p670_p1, %p669_p9 }
  0x3d   : > { %p673_p6 = por %p672_p4, %p671_p2 }
  0x3f   : > { %p674_p8 = pnand %p673_p6, %p667_p7 }
  0x41   : > { %677 = shalt.err (!%p674_p8)
}
  0x42   : > { %s678_s26 = scalar_lea.vmem %s921_s10, 64  ;;  %s784_s7 = smov [#allocation2]  }
  0x43   : > { %p679_p12 = scmp.ne.s32.totalorder %s921_s10, %s678_s26  ;;  %s683_s8 = sshll.u32 %s784_s7, 4  ;;  %s684_s8 = int_to_ptr.vmem [resolvable:$false] %s683_s8 }
  0x44   : > { %s685_s21 = scalar_lea.vmem %s684_s8, 128  ;;  %p686_p5 = scmp.lt.s32.totalorder %s921_s10, %s684_s8 }
  0x45   : > { %p681_p11 = pnand %p679_p12, %p665_p3  ;;  %p687_p9 = scmp.lt.s32.totalorder %s685_s21, %s678_s26 }
  0x47   : > { %p682_p0 = pneg %p681_p11  ;;  %p688_p1 = por %p687_p9, %p686_p5 }
  0x49   : > { %p689_p2 = pnand %p688_p1, %p682_p0 }
  0x4b   : > { %692 = shalt.err (!%p689_p2)
}
  0x4c   : > { %565 = dma.hbm_to_vmem [thread:$0]  (!%p925_p13), %s919_s9, 64, %s921_s10, %s191_s18  }
  0x4d   : > { %p1047_p7 = scmp.ne.s32.totalorder %s1041_s24, 0 }
  0x4e   : > { %s957_s19 = sand.u32 (!%p1047_p7), 1, %s763_s13   ;;  %p1048_p3 = scmp.ne.s32.totalorder (!%p1047_p7), %s1039_s22, 0 }
  0x4f   : > { %211 = sbr.rel (%p1047_p7) target bundleno = 351 (0x15f), region = 32  ;;  %s505_s25 = sshll.u32 (!%p1047_p7), %s957_s19, 2 }
  0x50   : > { %s214_s27 = scalar_lea.sflag (!%p1047_p7), [#allocation3], %s957_s19  ;;  %s961_s4 = scalar_lea.vmem (!%p1047_p7), [#allocation2], %s505_s25 }
  0x56   : > { %746 = dma.done.wait (%p1048_p3), %s214_s27, 64  }
  0x57   : > { %748 = vsyncadd (%p1048_p3), %s214_s27, 4294967232  ;;  %p1049_p13 = scmp.ne.s32.totalorder %s1037_s20, 0 }
  0x59   : > { %750 = dma.done.wait (%p1049_p13), [#allocation6], 1024  }
  0x5a   : > { %752 = vsyncadd (%p1049_p13), [#allocation6], 4294966272  ;;  %v785_v0 = vmov 0.0   ;;  %vm786_vm0 = vmmov 0   ;;  %v627_v1 = vld [vmem:[#allocation5] sm:$0xff]   ;;  %v628_v2 = vld [vmem:[#allocation5 + $0x8] sm:$0xff]  }
  0x5b   : > { %530 = vmatprep.subr.bf16.mxu0 %v785_v0  ;;  %546 = vmatprep.mubr.msk.bf16.mxu0 %vm786_vm0, %v785_v0  ;;  %v629_v3 = vld [vmem:[#allocation5 + $0x10] sm:$0xff]   ;;  %v630_v4 = vld [vmem:[#allocation5 + $0x18] sm:$0xff]   ;;  %v631_v5 = vld [vmem:[#allocation5 + $0x20] sm:$0xff]   ;;  %s507_s20 = sshll.u32 %s957_s19, 3  ;;  %s518_s9 = sshll.u32 %s771_s15, 7 }
  0x5c   : > { %531 = vmatpush3.bf16.msra.mxu0 %v627_v1  ;;  %v632_v6 = vld [vmem:[#allocation5 + $0x28] sm:$0xff]   ;;  %v633_v7 = vld [vmem:[#allocation5 + $0x30] sm:$0xff]   ;;  %v634_v8 = vld [vmem:[#allocation5 + $0x38] sm:$0xff]   ;;  %s246_s10 = scalar_lea.vmem [#allocation7], %s507_s20  ;;  %s980_s6 = scalar_lea.hbm %s1032_s3, %s518_s9 }
  0x5d   : > { %532 = vmatprep.subr.bf16.mxu0 %v785_v0  ;;  %v265_v9 = vld [vmem:[%s961_s4] sm:$0xf]  ;;  %s387_s11 = sshll.u32 %s246_s10, 4  ;;  %s373_s26 = scalar_lea.sflag [#allocation4], %s957_s19  ;;  %s982_s11 = int_to_ptr.vmem [resolvable:$true] %s387_s11 }
  0x5e   : > { %v508_v10 = vld [vmem:[%s1031_s2] ss:$0 sm:$0xff]  ;;  %s693_s15 = scalar_lea.vmem %s982_s11, 128  ;;  %s787_s7 = smov [#allocation7]  }
  0x5f   : > { %p694_p4 = scmp.ne.s32.totalorder %s982_s11, %s693_s15  ;;  %s697_s8 = sshll.u32 %s787_s7, 4  ;;  %s698_s8 = int_to_ptr.vmem [resolvable:$false] %s697_s8 }
  0x60   : > { %533 = vmatpush3.bf16.msra.mxu0 %v628_v2  ;;  %s699_s21 = scalar_lea.vmem %s698_s8, 256  ;;  %p700_p12 = scmp.lt.s32.totalorder %s982_s11, %s698_s8 }
  0x61   : > { %534 = vmatprep.subr.bf16.mxu0 %v785_v0  ;;  %p695_p6 = pnand %p694_p4, %p904_p10  ;;  %p701_p11 = scmp.lt.s32.totalorder %s699_s21, %s693_s15 }
  0x63   : > { %p696_p8 = pneg %p695_p6  ;;  %p702_p0 = por %p701_p11, %p700_p12 }
  0x64   : > { %535 = vmatpush3.bf16.msra.mxu0 %v629_v3 }
  0x65   : > { %536 = vmatprep.subr.bf16.mxu0 %v785_v0  ;;  %p703_p5 = pnand %p702_p0, %p696_p8 }
  0x68   : > { %537 = vmatpush3.bf16.msra.mxu0 %v630_v4 }
  0x69   : > { %538 = vmatprep.subr.bf16.mxu0 %v785_v0 }
  0x6c   : > { %539 = vmatpush3.bf16.msra.mxu0 %v631_v5 }
  0x6d   : > { %540 = vmatprep.subr.bf16.mxu0 %v785_v0 }
  0x70   : > { %541 = vmatpush3.bf16.msra.mxu0 %v632_v6 }
  0x71   : > { %542 = vmatprep.subr.bf16.mxu0 %v785_v0 }
  0x74   : > { %543 = vmatpush3.bf16.msra.mxu0 %v633_v7 }
  0x75   : > { %544 = vmatprep.subr.bf16.mxu0 %v785_v0 }
  0x78   : > { %545 = vmatpush3.bf16.msra.mxu0 %v634_v8 }
  0x7b   : > { %547 = vmatmul.mubr.bf16.vlgmr.msra.gmra.mrb[0].mxu0 %v265_v9 }
 0x14e   : > { %v364_v11 = vpop.f32.mrb[0].mxu0 }
 0x14f   : > { %v370_v12 = vadd.f32 %v508_v10, %v364_v11  ;;  %v548_v13 = vpop.f32.mrb[1].mxu0 }
 0x150   : > { %v367_v14 = vpop.f32.mrb[2].mxu0 }
 0x151   : > { %371 = vst [vmem:[%s246_s10] sm:$0xff] %v370_v12  ;;  %v549_v15 = vpop.f32.mrb[3].mxu0 }
 0x152   : > { %706 = shalt.err (!%p703_p5)
}
 0x153   : > { %s707_s19 = scalar_lea.hbm %s980_s6, 128  ;;  %s711_s4 = scalar_lea.hbm %s1032_s3, 256 }
 0x154   : > { %p708_p9 = scmp.ne.s32.totalorder %s980_s6, %s707_s19  ;;  %p712_p7 = scmp.lt.u32.totalorder %s980_s6, %s1032_s3 }
 0x155   : > { %p713_p3 = scmp.lt.u32.totalorder %s711_s4, %s707_s19  ;;  %p715_p4 = scmp.lt.u32.totalorder %s707_s19, %s980_s6 }
 0x156   : > { %p709_p1 = pnand %p708_p9, %p904_p10 }
 0x157   : > { %p714_p13 = por %p713_p3, %p712_p7 }
 0x158   : > { %p710_p2 = pneg %p709_p1 }
 0x159   : > { %p716_p6 = por %p715_p4, %p714_p13 }
 0x15b   : > { %p717_p8 = pnand %p716_p6, %p710_p2 }
 0x15d   : > { %720 = shalt.err (!%p717_p8)
}
 0x15e   : > { %556 = dma.vmem_to_hbm [thread:$0]  (%p904_p10), %s982_s11, 128, %s980_s6, %s373_s26  }
 0x15f PF: > { %s399_s24 = sand.u32 1, %s759_s12   ;;  %p1050_p12 = scmp.ne.s32.totalorder %s1040_s23, 0 }
 0x160   : > { %p1051_p11 = scmp.ge.s32.totalorder %s779_s17, 2  ;;  %s400_s9 = scalar_lea.sflag [#allocation4], %s399_s24 }
 0x162   : > { %p567_p0 = pnand %p1051_p11, %p1050_p12 }
 0x164   : > { %754 = dma.done.wait (!%p567_p0), %s400_s9, 128  }
 0x165   : > { %756 = vsyncadd (!%p567_p0), %s400_s9, 4294967168  ;;  %s20_s17 = sadd.s32 1, %s779_s17   ;;  %s1052_s12 = smov %s763_s13 }
 0x166   : > { %p17_p5 = scmp.ge.s32.totalorder %s20_s17, 4   ;;  %s1053_s13 = smov %s767_s14 }
 0x167   : > { %s1054_s14 = smov %s913_s5  ;;  %s1055_s15 = smov %s775_s16 }
 0x168   : > { %s1056_s16 = smov %s1058_s28  ;;  %19 = sbr.rel (!%p17_p5) target bundleno = 7 (0x7), region = 89 }
 0x16f   :  { %405 = vsyncpa [#allocation3], 1 }
 0x170   :  { %407 = vsyncpa [#allocation3 + $0x1], 1 }
 0x171   :  { %408 = vsyncpa [#allocation6], 1 }
 0x172   :  { %409 = vsyncpa [#allocation4], 1 }
 0x173   :  { %411 = vsyncpa [#allocation4 + $0x1], 1 }

</bundles_post_ra>
